<compile_context>
chip_gen: v7x
topology: tpu7x:2x2x1
jax: 0.10.0
libtpu: 0.0.40
codegen_flags: <defaults>
</compile_context>

<pallas_src>
import math

import jax
import jax.numpy as jnp
from jax import lax
from jax.experimental import pallas as pl
from jax.experimental.pallas import tpu as pltpu

K = 3            # kernel_size (dilation hard-coded to 1 in the torch module)
BN_EPS = 1e-5    # BatchNorm1d default eps
L1_EPS = 1e-12   # F.normalize default eps
MXU_DTYPE = jnp.bfloat16

SV_ROWS = 8      # sublane-aligned rows per level in the packed small-vector slab
R_B1, R_BD, R_BNS, R_BNB, R_BL = 0, 1, 2, 3, 4


def build_fused_kernel(level_cfgs, n_out, bb, t):
    """level_cfgs: tuple of dicts(cin, cout, use_downsample) -- static config."""
    n_levels = len(level_cfgs)
    m = bb * t

    def kernel(*refs):
        x_ref, sv_ref = refs[0], refs[1]
        out_ref = refs[-1]
        w_refs = refs[2:-1]
        wdc_ref = w_refs[-1]         # (L, n_out, n_out) bf16
        w_refs = w_refs[:-1]

        # (Bb, T, Cin0) -> (Bb*T, Cin0): fold batch into the sublane/time axis.
        feat = x_ref[...].reshape(m, level_cfgs[0]["cin"])          # f32

        # Per-sample causal masks (hoisted once, shared across all levels).
        t_in = lax.broadcasted_iota(jnp.int32, (m, 1), 0) % t
        keep = {s: t_in >= s for s in range(1, K)}

        acc = jnp.zeros((m, n_out), jnp.float32)                    # deconv acc

        wi = 0
        for lvl, cfg in enumerate(level_cfgs):
            cout, use_ds = cfg["cout"], cfg["use_downsample"]
            base = lvl * SV_ROWS

            w1_ref = w_refs[wi]; wi += 1                            # (K, Cin, Cout) bf16
            wd_ref = None
            if use_ds:
                wd_ref = w_refs[wi]; wi += 1                        # (Cin, Cout) bf16
            wl_ref = w_refs[wi]; wi += 1                            # (Cout, n_out) bf16

            b1 = sv_ref[base + R_B1:base + R_B1 + 1, :cout]
            bns = sv_ref[base + R_BNS:base + R_BNS + 1, :cout]
            bnb = sv_ref[base + R_BNB:base + R_BNB + 1, :cout]
            bl = sv_ref[base + R_BL:base + R_BL + 1, :n_out]

            fb = feat.astype(MXU_DTYPE)   # single bf16 copy, reused below

            # Causal conv: tap k uses x[t - (K-1-k)].  Unshifted tap first,
            # shifted taps via sublane rotate (XLU) + per-sample zero mask.
            h = jnp.dot(fb, w1_ref[K - 1], preferred_element_type=jnp.float32)
            for shift in range(1, K):
                xs = pltpu.roll(feat, shift, axis=0)                # f32 rotate
                xs = jnp.where(keep[shift], xs, 0.0).astype(MXU_DTYPE)
                h = h + jnp.dot(xs, w1_ref[K - 1 - shift],
                                preferred_element_type=jnp.float32)
            h = jnp.maximum(h + b1, 0.0)                            # relu1 (dropout = id)

            # Residual branch (specialized: no identity weight when not needed).
            if use_ds:
                bd = sv_ref[base + R_BD:base + R_BD + 1, :cout]
                res = jnp.dot(fb, wd_ref[...],
                              preferred_element_type=jnp.float32) + bd
            else:
                res = feat

            # Eval-mode BatchNorm1d folded into scale/shift, then outer ReLU.
            y = jnp.maximum((h + res) * bns + bnb, 0.0)

            # Head: Linear(F.normalize(y, p=1, dim=-1)).  The per-row L1 scale
            # commutes with the matmul -> exact f32 divide on the small result.
            denom = jnp.maximum(jnp.sum(jnp.abs(y), axis=-1, keepdims=True), L1_EPS)
            yb = y.astype(MXU_DTYPE)
            r = jnp.dot(yb, wl_ref[...],
                        preferred_element_type=jnp.float32) / denom + bl

            # Final 1x1 deconv over concat(level heads): accumulate immediately.
            acc = acc + jnp.dot(r.astype(MXU_DTYPE), wdc_ref[lvl],
                                preferred_element_type=jnp.float32)

            feat = y                                                # VMEM-resident carry

        b_dc = sv_ref[n_levels * SV_ROWS:n_levels * SV_ROWS + 1, :n_out]
        out_ref[...] = (acc + b_dc).astype(out_ref.dtype).reshape(bb, t, n_out)

    return kernel


def temporal_conv_net_forward(x, params, *, batch_block=None):
    """x: (B, T, num_inputs) f32 -> (B, T, outputs) f32.  Single pallas_call."""
    B, T, cin0 = x.shape
    n_levels = len(params["levels"])
    outputs = params["w_deconv"].shape[-1]

    if batch_block is None:
        batch_block = max(d for d in range(1, min(B, 8) + 1) if B % d == 0)
    assert B % batch_block == 0, (B, batch_block)
    bb = batch_block

    cmax = max([outputs] + [lvl["w1"].shape[-1] for lvl in params["levels"]])

    level_cfgs = []
    w_inputs = []
    w_specs = []
    sv = jnp.zeros(((n_levels + 1) * SV_ROWS, cmax), jnp.float32)

    def add_weight(a):
        a = a.astype(MXU_DTYPE)                         # pre-cast once, in the wrapper
        w_inputs.append(a)
        zeros = (0,) * a.ndim
        w_specs.append(pl.BlockSpec(a.shape, lambda b, _z=zeros: _z))

    def put_row(arr, row, vec):
        v = vec.reshape(-1)
        return arr.at[row, :v.shape[0]].set(v)

    for i, lvl in enumerate(params["levels"]):
        k_, cin, cout = lvl["w1"].shape
        assert k_ == K
        use_ds = lvl["wd"] is not None
        level_cfgs.append(dict(cin=cin, cout=cout, use_downsample=use_ds))
        add_weight(lvl["w1"])
        if use_ds:
            add_weight(lvl["wd"])
        add_weight(lvl["wl"])
        base = i * SV_ROWS
        sv = put_row(sv, base + R_B1, lvl["b1"])
        if use_ds:
            sv = put_row(sv, base + R_BD, lvl["bd"])
        sv = put_row(sv, base + R_BNS, lvl["bn_scale"])
        sv = put_row(sv, base + R_BNB, lvl["bn_shift"])
        sv = put_row(sv, base + R_BL, lvl["bl"])

    add_weight(params["w_deconv"].reshape(n_levels, outputs, outputs))
    sv = put_row(sv, n_levels * SV_ROWS, params["b_deconv"])

    kernel = build_fused_kernel(tuple(level_cfgs), outputs, bb, T)

    in_specs = ([pl.BlockSpec((bb, T, cin0), lambda b: (b, 0, 0)),
                 pl.BlockSpec(sv.shape, lambda b: (0, 0))]
                + w_specs)

    call = pl.pallas_call(
        kernel,
        out_shape=jax.ShapeDtypeStruct((B, T, outputs), jnp.float32),
        grid=(B // bb,),
        in_specs=in_specs,
        out_specs=pl.BlockSpec((bb, T, outputs), lambda b: (b, 0, 0)),
        compiler_params=pltpu.CompilerParams(
            dimension_semantics=("parallel",),          # split batch blocks over TCs
            vmem_limit_bytes=32 * 1024 * 1024),
    )
    return call(x, sv, *w_inputs)


def temporal_conv_net_reference(x, params):
    """Pure-JAX f32 reference mirroring the torch forward (eval mode)."""
    B, T, _ = x.shape
    feat = x
    results = []
    for lvl in params["levels"]:
        k_, cin, cout = lvl["w1"].shape
        acc = jnp.zeros((B, T, cout), jnp.float32)
        for k in range(k_):
            shift = k_ - 1 - k
            xs = jnp.pad(feat, ((0, 0), (shift, 0), (0, 0)))[:, :T, :]
            acc = acc + jnp.einsum("btc,cd->btd", xs, lvl["w1"][k])
        h = jax.nn.relu(acc + lvl["b1"])
        res = feat if lvl["wd"] is None else (
            jnp.einsum("btc,cd->btd", feat, lvl["wd"]) + lvl["bd"])
        y = jax.nn.relu((h + res) * lvl["bn_scale"] + lvl["bn_shift"])
        feat = y
        yn = y / jnp.maximum(jnp.sum(jnp.abs(y), axis=-1, keepdims=True), L1_EPS)
        results.append(jnp.einsum("btc,cd->btd", yn, lvl["wl"]) + lvl["bl"])
    cat = jnp.concatenate(results, axis=-1)
    return jnp.einsum("btc,cd->btd", cat, params["w_deconv"]) + params["b_deconv"]


def init_params(key, num_inputs, outputs, num_channels, kernel_size=3):
    """Deterministic synthetic parameters (shapes mirror the torch module)."""
    assert kernel_size == K
    n_levels = len(num_channels)
    keys = jax.random.split(key, 6 * n_levels + 2)
    ki = iter(keys)
    bn_scale_val = 1.0 / math.sqrt(1.0 + BN_EPS)   # eval BN, default running stats
    levels = []
    for i in range(n_levels):
        cin = num_inputs if i == 0 else num_channels[i - 1]
        cout = num_channels[i]
        use_ds = cin != cout
        # effective (post weight-norm) conv weight, stored as (K, Cin, Cout):
        # w1[k] corresponds to torch conv1.weight[:, :, k].T
        w1 = 0.01 * jax.random.normal(next(ki), (K, cin, cout), jnp.float32)
        b1 = 0.1 * jax.random.normal(next(ki), (1, cout), jnp.float32)
        kd0, kd1 = next(ki), next(ki)
        if use_ds:
            wd = 0.01 * jax.random.normal(kd0, (cin, cout), jnp.float32)
            bd = 0.1 * jax.random.normal(kd1, (1, cout), jnp.float32)
        else:
            wd, bd = None, None
        bn_scale = jnp.full((1, cout), bn_scale_val, jnp.float32)
        bn_shift = jnp.zeros((1, cout), jnp.float32)
        wl = (float(cout) ** -0.5) * jax.random.normal(
            next(ki), (cout, outputs), jnp.float32)
        bl = 0.1 * jax.random.normal(next(ki), (1, outputs), jnp.float32)
        levels.append(dict(w1=w1, b1=b1, wd=wd, bd=bd,
                           bn_scale=bn_scale, bn_shift=bn_shift, wl=wl, bl=bl))
    w_dc = (float(n_levels * outputs) ** -0.5) * jax.random.normal(
        next(ki), (n_levels * outputs, outputs), jnp.float32)
    b_dc = 0.1 * jax.random.normal(next(ki), (1, outputs), jnp.float32)
    return dict(levels=levels, w_deconv=w_dc, b_deconv=b_dc)


if __name__ == "__main__":
    B, T = 4, 16
    num_inputs, outputs = 8, 8
    num_channels = [16, 16]       # level 0 downsamples (8->16), level 1 identity res

    key = jax.random.PRNGKey(0)
    kx, kp = jax.random.split(key)
    x = jax.random.normal(kx, (B, T, num_inputs), jnp.float32)
    params = init_params(kp, num_inputs, outputs, num_channels)

    # batch_block=2 -> grid of 2 "parallel" steps, 2 samples folded per step.
    out = temporal_conv_net_forward(x, params, batch_block=2)
    out = jax.block_until_ready(out)
    assert out.shape == (B, T, outputs), out.shape
    assert bool(jnp.all(jnp.isfinite(out)))

    ref = temporal_conv_net_reference(x, params)
    max_err = float(jnp.max(jnp.abs(out - ref)))
    assert bool(jnp.allclose(out, ref, atol=3e-2, rtol=1e-1)), max_err

    print("KERNEL_OK")
</pallas_src>

<mosaic_0001>
module attributes {stable_mosaic.version = 11 : i64} {
  func.func @kernel(%arg0: i32, %arg1: memref<2x16x8xf32, #tpu.memory_space<vmem>>, %arg2: memref<24x16xf32, #tpu.memory_space<vmem>>, %arg3: memref<3x8x16xbf16, #tpu.memory_space<vmem>>, %arg4: memref<8x16xbf16, #tpu.memory_space<vmem>>, %arg5: memref<16x8xbf16, #tpu.memory_space<vmem>>, %arg6: memref<3x16x16xbf16, #tpu.memory_space<vmem>>, %arg7: memref<16x8xbf16, #tpu.memory_space<vmem>>, %arg8: memref<2x8x8xbf16, #tpu.memory_space<vmem>>, %arg9: memref<2x16x8xf32, #tpu.memory_space<vmem>>) attributes {dimension_semantics = [#tpu.dimension_semantics<parallel>], iteration_bounds = array<i64: 2>, scalar_prefetch = 0 : i64, scratch_operands = 0 : i64, tpu.core_type = #tpu.core_type<tc>, window_params = [{transform_indices = @transform_0, window_bounds = array<i64: 2, 16, 8>}, {pipeline_mode = #tpu.pipeline_mode<synchronous>, transform_indices = @transform_1, window_bounds = array<i64: 24, 16>}, {pipeline_mode = #tpu.pipeline_mode<synchronous>, transform_indices = @transform_2, window_bounds = array<i64: 3, 8, 16>}, {pipeline_mode = #tpu.pipeline_mode<synchronous>, transform_indices = @transform_3, window_bounds = array<i64: 8, 16>}, {pipeline_mode = #tpu.pipeline_mode<synchronous>, transform_indices = @transform_4, window_bounds = array<i64: 16, 8>}, {pipeline_mode = #tpu.pipeline_mode<synchronous>, transform_indices = @transform_5, window_bounds = array<i64: 3, 16, 16>}, {pipeline_mode = #tpu.pipeline_mode<synchronous>, transform_indices = @transform_6, window_bounds = array<i64: 16, 8>}, {pipeline_mode = #tpu.pipeline_mode<synchronous>, transform_indices = @transform_7, window_bounds = array<i64: 2, 8, 8>}, {transform_indices = @transform_8, window_bounds = array<i64: 2, 16, 8>}]} {
    %c0 = arith.constant 0 : index
    %c0_0 = arith.constant 0 : index
    %c0_1 = arith.constant 0 : index
    %0 = vector.load %arg1[%c0, %c0_0, %c0_1] : memref<2x16x8xf32, #tpu.memory_space<vmem>>, vector<2x16x8xf32>
    %1 = vector.shape_cast %0 : vector<2x16x8xf32> to vector<32x8xf32>
    %2 = tpu.iota {dimensions = array<i32: 0>} : vector<32x1xi32>
    %c16_i32 = arith.constant 16 : i32
    %c0_i32 = arith.constant 0 : i32
    %3 = arith.cmpi eq, %c16_i32, %c0_i32 : i32
    %c1_i32 = arith.constant 1 : i32
    %4 = arith.select %3, %c1_i32, %c16_i32 : i32
    %5 = vector.broadcast %4 : i32 to vector<32x1xi32>
    %6 = arith.remsi %2, %5 : vector<32x1xi32>
    %c0_i32_2 = arith.constant 0 : i32
    %7 = vector.broadcast %c0_i32_2 : i32 to vector<32x1xi32>
    %8 = arith.cmpi ne, %6, %7 : vector<32x1xi32>
    %c0_i32_3 = arith.constant 0 : i32
    %9 = vector.broadcast %c0_i32_3 : i32 to vector<32x1xi32>
    %10 = arith.cmpi slt, %6, %9 : vector<32x1xi32>
    %c0_i32_4 = arith.constant 0 : i32
    %11 = arith.cmpi slt, %4, %c0_i32_4 : i32
    %12 = vector.broadcast %11 : i1 to vector<32x1xi1>
    %13 = vector.broadcast %12 : vector<32x1xi1> to vector<32x1xi1>
    %14 = arith.xori %10, %13 : vector<32x1xi1>
    %15 = arith.andi %14, %8 : vector<32x1xi1>
    %16 = vector.broadcast %4 : i32 to vector<32x1xi32>
    %17 = arith.addi %6, %16 : vector<32x1xi32>
    %18 = arith.select %15, %17, %6 : vector<32x1xi1>, vector<32x1xi32>
    %c1_i32_5 = arith.constant 1 : i32
    %19 = vector.broadcast %c1_i32_5 : i32 to vector<32x1xi32>
    %20 = arith.cmpi sge, %18, %19 : vector<32x1xi32>
    %c2_i32 = arith.constant 2 : i32
    %21 = vector.broadcast %c2_i32 : i32 to vector<32x1xi32>
    %22 = arith.cmpi sge, %18, %21 : vector<32x1xi32>
    %cst = arith.constant 0.000000e+00 : f32
    %23 = vector.broadcast %cst : f32 to vector<32x8xf32>
    %c0_6 = arith.constant 0 : index
    %c0_7 = arith.constant 0 : index
    %24 = vector.load %arg2[%c0_6, %c0_7] : memref<24x16xf32, #tpu.memory_space<vmem>>, vector<1x16xf32>
    %c2 = arith.constant 2 : index
    %c0_8 = arith.constant 0 : index
    %25 = vector.load %arg2[%c2, %c0_8] : memref<24x16xf32, #tpu.memory_space<vmem>>, vector<1x16xf32>
    %c3 = arith.constant 3 : index
    %c0_9 = arith.constant 0 : index
    %26 = vector.load %arg2[%c3, %c0_9] : memref<24x16xf32, #tpu.memory_space<vmem>>, vector<1x16xf32>
    %c4 = arith.constant 4 : index
    %c0_10 = arith.constant 0 : index
    %27 = vector.load %arg2[%c4, %c0_10] : memref<24x16xf32, #tpu.memory_space<vmem>>, vector<1x8xf32>
    %28 = arith.truncf %1 : vector<32x8xf32> to vector<32x8xbf16>
    %c2_11 = arith.constant 2 : index
    %c0_12 = arith.constant 0 : index
    %c0_13 = arith.constant 0 : index
    %29 = vector.load %arg3[%c2_11, %c0_12, %c0_13] : memref<3x8x16xbf16, #tpu.memory_space<vmem>>, vector<1x8x16xbf16>
    %30 = vector.shape_cast %29 : vector<1x8x16xbf16> to vector<8x16xbf16>
    %cst_14 = arith.constant dense<0.000000e+00> : vector<32x16xf32>
    %31 = tpu.matmul %28, %30, %cst_14 {dimension_numbers = #tpu.dot_dimension_numbers<[1], [0], [0], [1], [0, 0, 1, 1], [], []>} : vector<32x8xbf16>, vector<8x16xbf16>, vector<32x16xf32> -> vector<32x16xf32>
    %c1_i32_15 = arith.constant 1 : i32
    %32 = tpu.dynamic_rotate %1 by %c1_i32_15 dim 0 : vector<32x8xf32>, i32 -> vector<32x8xf32>
    %cst_16 = arith.constant 0.000000e+00 : f32
    %33 = vector.shape_cast %20 : vector<32x1xi1> to vector<32x1xi1>
    %34 = vector.broadcast %33 : vector<32x1xi1> to vector<32x8xi1>
    %35 = vector.broadcast %cst_16 : f32 to vector<32x8xf32>
    %36 = arith.select %34, %32, %35 : vector<32x8xi1>, vector<32x8xf32>
    %37 = arith.truncf %36 : vector<32x8xf32> to vector<32x8xbf16>
    %c1 = arith.constant 1 : index
    %c0_17 = arith.constant 0 : index
    %c0_18 = arith.constant 0 : index
    %38 = vector.load %arg3[%c1, %c0_17, %c0_18] : memref<3x8x16xbf16, #tpu.memory_space<vmem>>, vector<1x8x16xbf16>
    %39 = vector.shape_cast %38 : vector<1x8x16xbf16> to vector<8x16xbf16>
    %cst_19 = arith.constant dense<0.000000e+00> : vector<32x16xf32>
    %40 = tpu.matmul %37, %39, %cst_19 {dimension_numbers = #tpu.dot_dimension_numbers<[1], [0], [0], [1], [0, 0, 1, 1], [], []>} : vector<32x8xbf16>, vector<8x16xbf16>, vector<32x16xf32> -> vector<32x16xf32>
    %41 = arith.addf %31, %40 : vector<32x16xf32>
    %c2_i32_20 = arith.constant 2 : i32
    %42 = tpu.dynamic_rotate %1 by %c2_i32_20 dim 0 : vector<32x8xf32>, i32 -> vector<32x8xf32>
    %cst_21 = arith.constant 0.000000e+00 : f32
    %43 = vector.shape_cast %22 : vector<32x1xi1> to vector<32x1xi1>
    %44 = vector.broadcast %43 : vector<32x1xi1> to vector<32x8xi1>
    %45 = vector.broadcast %cst_21 : f32 to vector<32x8xf32>
    %46 = arith.select %44, %42, %45 : vector<32x8xi1>, vector<32x8xf32>
    %47 = arith.truncf %46 : vector<32x8xf32> to vector<32x8xbf16>
    %c0_22 = arith.constant 0 : index
    %c0_23 = arith.constant 0 : index
    %c0_24 = arith.constant 0 : index
    %48 = vector.load %arg3[%c0_22, %c0_23, %c0_24] : memref<3x8x16xbf16, #tpu.memory_space<vmem>>, vector<1x8x16xbf16>
    %49 = vector.shape_cast %48 : vector<1x8x16xbf16> to vector<8x16xbf16>
    %cst_25 = arith.constant dense<0.000000e+00> : vector<32x16xf32>
    %50 = tpu.matmul %47, %49, %cst_25 {dimension_numbers = #tpu.dot_dimension_numbers<[1], [0], [0], [1], [0, 0, 1, 1], [], []>} : vector<32x8xbf16>, vector<8x16xbf16>, vector<32x16xf32> -> vector<32x16xf32>
    %51 = arith.addf %41, %50 : vector<32x16xf32>
    %52 = vector.broadcast %24 : vector<1x16xf32> to vector<32x16xf32>
    %53 = arith.addf %51, %52 : vector<32x16xf32>
    %cst_26 = arith.constant 0.000000e+00 : f32
    %54 = vector.broadcast %cst_26 : f32 to vector<32x16xf32>
    %55 = arith.maximumf %53, %54 : vector<32x16xf32>
    %c1_27 = arith.constant 1 : index
    %c0_28 = arith.constant 0 : index
    %56 = vector.load %arg2[%c1_27, %c0_28] : memref<24x16xf32, #tpu.memory_space<vmem>>, vector<1x16xf32>
    %c0_29 = arith.constant 0 : index
    %c0_30 = arith.constant 0 : index
    %57 = vector.load %arg4[%c0_29, %c0_30] : memref<8x16xbf16, #tpu.memory_space<vmem>>, vector<8x16xbf16>
    %cst_31 = arith.constant dense<0.000000e+00> : vector<32x16xf32>
    %58 = tpu.matmul %28, %57, %cst_31 {dimension_numbers = #tpu.dot_dimension_numbers<[1], [0], [0], [1], [0, 0, 1, 1], [], []>} : vector<32x8xbf16>, vector<8x16xbf16>, vector<32x16xf32> -> vector<32x16xf32>
    %59 = vector.broadcast %56 : vector<1x16xf32> to vector<32x16xf32>
    %60 = arith.addf %58, %59 : vector<32x16xf32>
    %61 = arith.addf %55, %60 : vector<32x16xf32>
    %62 = vector.broadcast %25 : vector<1x16xf32> to vector<32x16xf32>
    %63 = arith.mulf %61, %62 : vector<32x16xf32>
    %64 = vector.broadcast %26 : vector<1x16xf32> to vector<32x16xf32>
    %65 = arith.addf %63, %64 : vector<32x16xf32>
    %cst_32 = arith.constant 0.000000e+00 : f32
    %66 = vector.broadcast %cst_32 : f32 to vector<32x16xf32>
    %67 = arith.maximumf %65, %66 : vector<32x16xf32>
    %68 = math.absf %67 : vector<32x16xf32>
    %cst_33 = arith.constant dense<0.000000e+00> : vector<32xf32>
    %69 = vector.multi_reduction <add>, %68, %cst_33 [1] : vector<32x16xf32> to vector<32xf32>
    %70 = vector.shape_cast %69 : vector<32xf32> to vector<32x1xf32>
    %cst_34 = arith.constant 9.99999996E-13 : f32
    %71 = vector.broadcast %cst_34 : f32 to vector<32x1xf32>
    %72 = arith.maximumf %70, %71 : vector<32x1xf32>
    %73 = arith.truncf %67 : vector<32x16xf32> to vector<32x16xbf16>
    %c0_35 = arith.constant 0 : index
    %c0_36 = arith.constant 0 : index
    %74 = vector.load %arg5[%c0_35, %c0_36] : memref<16x8xbf16, #tpu.memory_space<vmem>>, vector<16x8xbf16>
    %cst_37 = arith.constant dense<0.000000e+00> : vector<32x8xf32>
    %75 = tpu.matmul %73, %74, %cst_37 {dimension_numbers = #tpu.dot_dimension_numbers<[1], [0], [0], [1], [0, 0, 1, 1], [], []>} : vector<32x16xbf16>, vector<16x8xbf16>, vector<32x8xf32> -> vector<32x8xf32>
    %76 = vector.broadcast %72 : vector<32x1xf32> to vector<32x8xf32>
    %77 = arith.divf %75, %76 : vector<32x8xf32>
    %78 = vector.broadcast %27 : vector<1x8xf32> to vector<32x8xf32>
    %79 = arith.addf %77, %78 : vector<32x8xf32>
    %80 = arith.truncf %79 : vector<32x8xf32> to vector<32x8xbf16>
    %c0_38 = arith.constant 0 : index
    %c0_39 = arith.constant 0 : index
    %c0_40 = arith.constant 0 : index
    %81 = vector.load %arg8[%c0_38, %c0_39, %c0_40] : memref<2x8x8xbf16, #tpu.memory_space<vmem>>, vector<1x8x8xbf16>
    %82 = vector.shape_cast %81 : vector<1x8x8xbf16> to vector<8x8xbf16>
    %cst_41 = arith.constant dense<0.000000e+00> : vector<32x8xf32>
    %83 = tpu.matmul %80, %82, %cst_41 {dimension_numbers = #tpu.dot_dimension_numbers<[1], [0], [0], [1], [0, 0, 1, 1], [], []>} : vector<32x8xbf16>, vector<8x8xbf16>, vector<32x8xf32> -> vector<32x8xf32>
    %84 = arith.addf %23, %83 : vector<32x8xf32>
    %c8 = arith.constant 8 : index
    %c0_42 = arith.constant 0 : index
    %85 = vector.load %arg2[%c8, %c0_42] : memref<24x16xf32, #tpu.memory_space<vmem>>, vector<1x16xf32>
    %c10 = arith.constant 10 : index
    %c0_43 = arith.constant 0 : index
    %86 = vector.load %arg2[%c10, %c0_43] : memref<24x16xf32, #tpu.memory_space<vmem>>, vector<1x16xf32>
    %c11 = arith.constant 11 : index
    %c0_44 = arith.constant 0 : index
    %87 = vector.load %arg2[%c11, %c0_44] : memref<24x16xf32, #tpu.memory_space<vmem>>, vector<1x16xf32>
    %c12 = arith.constant 12 : index
    %c0_45 = arith.constant 0 : index
    %88 = vector.load %arg2[%c12, %c0_45] : memref<24x16xf32, #tpu.memory_space<vmem>>, vector<1x8xf32>
    %89 = arith.truncf %67 : vector<32x16xf32> to vector<32x16xbf16>
    %c2_46 = arith.constant 2 : index
    %c0_47 = arith.constant 0 : index
    %c0_48 = arith.constant 0 : index
    %90 = vector.load %arg6[%c2_46, %c0_47, %c0_48] : memref<3x16x16xbf16, #tpu.memory_space<vmem>>, vector<1x16x16xbf16>
    %91 = vector.shape_cast %90 : vector<1x16x16xbf16> to vector<16x16xbf16>
    %cst_49 = arith.constant dense<0.000000e+00> : vector<32x16xf32>
    %92 = tpu.matmul %89, %91, %cst_49 {dimension_numbers = #tpu.dot_dimension_numbers<[1], [0], [0], [1], [0, 0, 1, 1], [], []>} : vector<32x16xbf16>, vector<16x16xbf16>, vector<32x16xf32> -> vector<32x16xf32>
    %c1_i32_50 = arith.constant 1 : i32
    %93 = tpu.dynamic_rotate %67 by %c1_i32_50 dim 0 : vector<32x16xf32>, i32 -> vector<32x16xf32>
    %cst_51 = arith.constant 0.000000e+00 : f32
    %94 = vector.shape_cast %20 : vector<32x1xi1> to vector<32x1xi1>
    %95 = vector.broadcast %94 : vector<32x1xi1> to vector<32x16xi1>
    %96 = vector.broadcast %cst_51 : f32 to vector<32x16xf32>
    %97 = arith.select %95, %93, %96 : vector<32x16xi1>, vector<32x16xf32>
    %98 = arith.truncf %97 : vector<32x16xf32> to vector<32x16xbf16>
    %c1_52 = arith.constant 1 : index
    %c0_53 = arith.constant 0 : index
    %c0_54 = arith.constant 0 : index
    %99 = vector.load %arg6[%c1_52, %c0_53, %c0_54] : memref<3x16x16xbf16, #tpu.memory_space<vmem>>, vector<1x16x16xbf16>
    %100 = vector.shape_cast %99 : vector<1x16x16xbf16> to vector<16x16xbf16>
    %cst_55 = arith.constant dense<0.000000e+00> : vector<32x16xf32>
    %101 = tpu.matmul %98, %100, %cst_55 {dimension_numbers = #tpu.dot_dimension_numbers<[1], [0], [0], [1], [0, 0, 1, 1], [], []>} : vector<32x16xbf16>, vector<16x16xbf16>, vector<32x16xf32> -> vector<32x16xf32>
    %102 = arith.addf %92, %101 : vector<32x16xf32>
    %c2_i32_56 = arith.constant 2 : i32
    %103 = tpu.dynamic_rotate %67 by %c2_i32_56 dim 0 : vector<32x16xf32>, i32 -> vector<32x16xf32>
    %cst_57 = arith.constant 0.000000e+00 : f32
    %104 = vector.shape_cast %22 : vector<32x1xi1> to vector<32x1xi1>
    %105 = vector.broadcast %104 : vector<32x1xi1> to vector<32x16xi1>
    %106 = vector.broadcast %cst_57 : f32 to vector<32x16xf32>
    %107 = arith.select %105, %103, %106 : vector<32x16xi1>, vector<32x16xf32>
    %108 = arith.truncf %107 : vector<32x16xf32> to vector<32x16xbf16>
    %c0_58 = arith.constant 0 : index
    %c0_59 = arith.constant 0 : index
    %c0_60 = arith.constant 0 : index
    %109 = vector.load %arg6[%c0_58, %c0_59, %c0_60] : memref<3x16x16xbf16, #tpu.memory_space<vmem>>, vector<1x16x16xbf16>
    %110 = vector.shape_cast %109 : vector<1x16x16xbf16> to vector<16x16xbf16>
    %cst_61 = arith.constant dense<0.000000e+00> : vector<32x16xf32>
    %111 = tpu.matmul %108, %110, %cst_61 {dimension_numbers = #tpu.dot_dimension_numbers<[1], [0], [0], [1], [0, 0, 1, 1], [], []>} : vector<32x16xbf16>, vector<16x16xbf16>, vector<32x16xf32> -> vector<32x16xf32>
    %112 = arith.addf %102, %111 : vector<32x16xf32>
    %113 = vector.broadcast %85 : vector<1x16xf32> to vector<32x16xf32>
    %114 = arith.addf %112, %113 : vector<32x16xf32>
    %cst_62 = arith.constant 0.000000e+00 : f32
    %115 = vector.broadcast %cst_62 : f32 to vector<32x16xf32>
    %116 = arith.maximumf %114, %115 : vector<32x16xf32>
    %117 = arith.addf %116, %67 : vector<32x16xf32>
    %118 = vector.broadcast %86 : vector<1x16xf32> to vector<32x16xf32>
    %119 = arith.mulf %117, %118 : vector<32x16xf32>
    %120 = vector.broadcast %87 : vector<1x16xf32> to vector<32x16xf32>
    %121 = arith.addf %119, %120 : vector<32x16xf32>
    %cst_63 = arith.constant 0.000000e+00 : f32
    %122 = vector.broadcast %cst_63 : f32 to vector<32x16xf32>
    %123 = arith.maximumf %121, %122 : vector<32x16xf32>
    %124 = math.absf %123 : vector<32x16xf32>
    %cst_64 = arith.constant dense<0.000000e+00> : vector<32xf32>
    %125 = vector.multi_reduction <add>, %124, %cst_64 [1] : vector<32x16xf32> to vector<32xf32>
    %126 = vector.shape_cast %125 : vector<32xf32> to vector<32x1xf32>
    %cst_65 = arith.constant 9.99999996E-13 : f32
    %127 = vector.broadcast %cst_65 : f32 to vector<32x1xf32>
    %128 = arith.maximumf %126, %127 : vector<32x1xf32>
    %129 = arith.truncf %123 : vector<32x16xf32> to vector<32x16xbf16>
    %c0_66 = arith.constant 0 : index
    %c0_67 = arith.constant 0 : index
    %130 = vector.load %arg7[%c0_66, %c0_67] : memref<16x8xbf16, #tpu.memory_space<vmem>>, vector<16x8xbf16>
    %cst_68 = arith.constant dense<0.000000e+00> : vector<32x8xf32>
    %131 = tpu.matmul %129, %130, %cst_68 {dimension_numbers = #tpu.dot_dimension_numbers<[1], [0], [0], [1], [0, 0, 1, 1], [], []>} : vector<32x16xbf16>, vector<16x8xbf16>, vector<32x8xf32> -> vector<32x8xf32>
    %132 = vector.broadcast %128 : vector<32x1xf32> to vector<32x8xf32>
    %133 = arith.divf %131, %132 : vector<32x8xf32>
    %134 = vector.broadcast %88 : vector<1x8xf32> to vector<32x8xf32>
    %135 = arith.addf %133, %134 : vector<32x8xf32>
    %136 = arith.truncf %135 : vector<32x8xf32> to vector<32x8xbf16>
    %c1_69 = arith.constant 1 : index
    %c0_70 = arith.constant 0 : index
    %c0_71 = arith.constant 0 : index
    %137 = vector.load %arg8[%c1_69, %c0_70, %c0_71] : memref<2x8x8xbf16, #tpu.memory_space<vmem>>, vector<1x8x8xbf16>
    %138 = vector.shape_cast %137 : vector<1x8x8xbf16> to vector<8x8xbf16>
    %cst_72 = arith.constant dense<0.000000e+00> : vector<32x8xf32>
    %139 = tpu.matmul %136, %138, %cst_72 {dimension_numbers = #tpu.dot_dimension_numbers<[1], [0], [0], [1], [0, 0, 1, 1], [], []>} : vector<32x8xbf16>, vector<8x8xbf16>, vector<32x8xf32> -> vector<32x8xf32>
    %140 = arith.addf %84, %139 : vector<32x8xf32>
    %c16 = arith.constant 16 : index
    %c0_73 = arith.constant 0 : index
    %141 = vector.load %arg2[%c16, %c0_73] : memref<24x16xf32, #tpu.memory_space<vmem>>, vector<1x8xf32>
    %142 = vector.broadcast %141 : vector<1x8xf32> to vector<32x8xf32>
    %143 = arith.addf %140, %142 : vector<32x8xf32>
    %144 = vector.shape_cast %143 : vector<32x8xf32> to vector<2x16x8xf32>
    %c0_74 = arith.constant 0 : index
    %c0_75 = arith.constant 0 : index
    %c0_76 = arith.constant 0 : index
    %145 = vector.load %arg9[%c0_74, %c0_75, %c0_76] : memref<2x16x8xf32, #tpu.memory_space<vmem>>, vector<2x16x8xf32>
    tpu.vector_store %arg9[%c0_74, %c0_75, %c0_76], %144 {strides = array<i32>} : memref<2x16x8xf32, #tpu.memory_space<vmem>>, vector<2x16x8xf32>,
    return
  }
  func.func @transform_0(%arg0: i32) -> (i32, i32, i32) {
    %c0_i32 = arith.constant 0 : i32
    %c0_i32_0 = arith.constant 0 : i32
    %c0_i32_1 = arith.constant 0 : i32
    return %arg0, %c0_i32, %c0_i32_0 : i32, i32, i32
  }
  func.func @transform_1(%arg0: i32) -> (i32, i32) {
    %c0_i32 = arith.constant 0 : i32
    %c0_i32_0 = arith.constant 0 : i32
    %c0_i32_1 = arith.constant 0 : i32
    return %c0_i32, %c0_i32_0 : i32, i32
  }
  func.func @transform_2(%arg0: i32) -> (i32, i32, i32) {
    %c0_i32 = arith.constant 0 : i32
    %c0_i32_0 = arith.constant 0 : i32
    %c0_i32_1 = arith.constant 0 : i32
    %c0_i32_2 = arith.constant 0 : i32
    return %c0_i32, %c0_i32_0, %c0_i32_1 : i32, i32, i32
  }
  func.func @transform_3(%arg0: i32) -> (i32, i32) {
    %c0_i32 = arith.constant 0 : i32
    %c0_i32_0 = arith.constant 0 : i32
    %c0_i32_1 = arith.constant 0 : i32
    return %c0_i32, %c0_i32_0 : i32, i32
  }
  func.func @transform_4(%arg0: i32) -> (i32, i32) {
    %c0_i32 = arith.constant 0 : i32
    %c0_i32_0 = arith.constant 0 : i32
    %c0_i32_1 = arith.constant 0 : i32
    return %c0_i32, %c0_i32_0 : i32, i32
  }
  func.func @transform_5(%arg0: i32) -> (i32, i32, i32) {
    %c0_i32 = arith.constant 0 : i32
    %c0_i32_0 = arith.constant 0 : i32
    %c0_i32_1 = arith.constant 0 : i32
    %c0_i32_2 = arith.constant 0 : i32
    return %c0_i32, %c0_i32_0, %c0_i32_1 : i32, i32, i32
  }
  func.func @transform_6(%arg0: i32) -> (i32, i32) {
    %c0_i32 = arith.constant 0 : i32
    %c0_i32_0 = arith.constant 0 : i32
    %c0_i32_1 = arith.constant 0 : i32
    return %c0_i32, %c0_i32_0 : i32, i32
  }
  func.func @transform_7(%arg0: i32) -> (i32, i32, i32) {
    %c0_i32 = arith.constant 0 : i32
    %c0_i32_0 = arith.constant 0 : i32
    %c0_i32_1 = arith.constant 0 : i32
    %c0_i32_2 = arith.constant 0 : i32
    return %c0_i32, %c0_i32_0, %c0_i32_1 : i32, i32, i32
  }
  func.func @transform_8(%arg0: i32) -> (i32, i32, i32) {
    %c0_i32 = arith.constant 0 : i32
    %c0_i32_0 = arith.constant 0 : i32
    %c0_i32_1 = arith.constant 0 : i32
    return %arg0, %c0_i32, %c0_i32_0 : i32, i32, i32
  }
}

</mosaic_0001>

<bundles_post_ra>
// kernel: tpu_custom_call.1
= control target key start
LH: loop header
LB: loop body
LE: loop exit
PB: predicated region body
PF: predicated region fallthrough
CT: control target
= control target key end

     0   :  { %s1631_s27 = smov 0   ;;  %s1874_s0 = inlined_call_operand.vmem [shape: f32[4,16,8], index: 0, kind: input, shape index: {}]   ;;  %s1875_s1 = inlined_call_operand.vmem [shape: f32[24,16], index: 1, kind: input, shape index: {}]   ;;  %s1876_s2 = inlined_call_operand.vmem [shape: bf16[3,8,16], index: 2, kind: input, shape index: {}]   ;;  %s1877_s3 = inlined_call_operand.vmem [shape: bf16[8,16], index: 3, kind: input, shape index: {}]   ;;  %s1878_s4 = inlined_call_operand.vmem [shape: bf16[16,8], index: 4, kind: input, shape index: {}]   ;;  %s1879_s5 = inlined_call_operand.vmem [shape: bf16[3,16,16], index: 5, kind: input, shape index: {}]   ;;  %s1880_s6 = inlined_call_operand.vmem [shape: bf16[16,8], index: 6, kind: input, shape index: {}]   ;;  %s1881_s7 = inlined_call_operand.vmem [shape: bf16[2,8,8], index: 7, kind: input, shape index: {}]   ;;  %s1882_s8 = inlined_call_operand.vmem [shape: f32[4,16,8], index: 8, kind: output, shape index: {}]  }
   0x1 LB: > { %s1365_s28 = sadd.s32 4294967295, %s1584_s27   ;;  %p1369_p0 = scmp.ge.s32.totalorder %s1584_s27, 1  ;;  %s1584_s27 = sphi %s1631_s27, %s18_s27  }
   0x2   : > { %p264_p1 = scmp.lt.s32.totalorder %s1584_s27, 3 }
   0x4   : > { %p265_p2 = pnand %p1369_p0, %p264_p1 }
   0x5   : > { %v1377_v0 = vld [vmem:[%s1876_s2 + $0x4] sm:$0xf] (!%p265_p2)  ;;  %vm420_vm0 = vcmask (!%p265_p2), 1043456   ;;  %s1370_s9 = sshll.u32 (!%p265_p2), %s1365_s28, 1  ;;  %v319_v1 = vlaneseq (!%p265_p2)  ;;  %v1376_v3 = vld [vmem:[%s1876_s2 + $0x8] sm:$0xf] (!%p265_p2) }
   0x6   : > { %268 = sbr.rel (%p265_p2) target bundleno = 992 (0x3e0), region = 52  ;;  %1543 = vmatprep.subr.msk.bf16.mxu0 (!%p265_p2), %vm420_vm0, %v1377_v0  ;;  %v422_v2 = vsel (!%p265_p2), %vm420_vm0, %v1377_v0, 0  ;;  %p301_p3 = scmp.lt.s32.totalorder (!%p265_p2), %s1370_s9, 3  ;;  %v630_v5 = vld [vmem:[%s1877_s3] sm:$0xf] (!%p265_p2)  ;;  %vm413_vm4 = vcmask (!%p265_p2), 64512  }
   0x7   : > { %1458 = vmatpush3.bf16.msra.mxu0 (!%p265_p2), %v422_v2  ;;  %v1647_v4 = vshrl.u32 (!%p265_p2), %v319_v1, 7  ;;  %1546 = vmatprep.subr.msk.bf16.mxu1 (!%p265_p2), %vm420_vm0, %v630_v5  ;;  %v636_v6 = vsel (!%p265_p2), %vm420_vm0, %v630_v5, 0  ;;  %v480_v30 = vsel (!%p265_p2), %vm420_vm0, %v1376_v3, 0  ;;  %v554_v33 = vld [vmem:[%s1876_s2] sm:$0xf] (!%p265_p2)  ;;  %v1558_v48 = vld [vmem:[%s1879_s5 + $0x8] sm:$0xff] (!%p265_p2)  }
   0x8   : > { %1544 = vmatprep.subr.msk.bf16.mxu0 (!%p265_p2), %vm420_vm0, %v1376_v3  ;;  %1476 = vmatpush3.bf16.msra.mxu1 (!%p265_p2), %v636_v6  ;;  %v562_v40 = vsel (!%p265_p2), %vm420_vm0, %v554_v33, 0  ;;  %v1557_v47 = vld [vmem:[%s1878_s4] sm:$0xff] (!%p265_p2)   ;;  %vm715_vm8 = vcmask (!%p265_p2), 130048  }
   0x9   : > { %v328_v7 = vand.u32 (!%p265_p2), 15, %v1647_v4  ;;  %v322_v8 = vadd.s32 (!%p265_p2), 16, %v1647_v4  ;;  %vm392_vm1 = vcmp.lt.s32.totalorder (!%p265_p2), %v1647_v4, 1  ;;  %vm535_vm5 = vcmp.lt.s32.totalorder (!%p265_p2), %v1647_v4, 2  ;;  %1481 = vmatprep.subr.bf16.mxu1 (!%p265_p2), %v1557_v47  ;;  %v1385_v53 = vld [vmem:[%s1875_s1 + $0x1] ss:$0 sm:$0xff] (!%p265_p2) }
   0xa   : > { %v1384_v54 = vld [vmem:[%s1875_s1] ss:$0 sm:$0xff] (!%p265_p2)  ;;  %v1388_v1 = vld [vmem:[%s1875_s1 + $0x2] ss:$0 sm:$0xff] (!%p265_p2)  ;;  %v1407_v4 = vld [vmem:[%s1875_s1 + $0x8] ss:$0 sm:$0xff] (!%p265_p2) }
   0xb   : > { %v342_v9 = vand.u32 (!%p265_p2), 15, %v322_v8  ;;  %vm1666_vm2 = vcmp.ge.s32.totalorder (!%p265_p2), %v328_v7, 1  ;;  %vm1697_vm6 = vcmp.ge.s32.totalorder (!%p265_p2), %v328_v7, 2  ;;  %v1389_v8 = vld [vmem:[%s1875_s1 + $0x3] ss:$0 sm:$0xff] (!%p265_p2) }
   0xc   : > { %v1560_v13 = vld [vmem:[%s1879_s5] sm:$0xff] (!%p265_p2)  }
   0xd   : > { %s1892_s9 = smov (!%p301_p3, %s1370_s9), 3  ;;  %vm1670_vm3 = vcmp.ge.s32.totalorder %v342_v9, 1  ;;  %vm1710_vm7 = vcmp.ge.s32.totalorder %v342_v9, 2  ;;  %v1561_v35 = vld [vmem:[%s1880_s6] sm:$0xff]  }
   0xe   : > { %s1422_s14 = sshll.u32 %s1892_s9, 4 }
   0xf   : > { %s305_s17 = scalar_lea.vmem %s1874_s0, %s1422_s14  ;;  %s312_s18 = scalar_lea.vmem %s1882_s8, %s1422_s14 }
  0x10   : > { %v315_v10 = vld [vmem:[%s305_s17] sm:$0xff]  ;;  %v316_v11 = vld [vmem:[%s305_s17 + $0x8] sm:$0xff]  ;;  %v318_v12 = vld [vmem:[%s305_s17 + $0x18] sm:$0xff] }
  0x11   : > { %v388_v14 = vrot.slane %v315_v10, 7  ;;  %v389_v15 = vrot.slane %v316_v11, 7  ;;  %v391_v16 = vrot.slane %v318_v12, 7  ;;  %v317_v17 = vld [vmem:[%s305_s17 + $0x10] sm:$0xff]  ;;  %v384_v22 = vpack.c.bf16 %v316_v11, %v315_v10 }
  0x12   : > { %v390_v21 = vrot.slane %v317_v17, 7  ;;  %v385_v24 = vpack.c.bf16 %v318_v12, %v317_v17  ;;  %v531_v31 = vrot.slane %v315_v10, 6  ;;  %v534_v32 = vrot.slane %v318_v12, 6 }
  0x13   : > { %v395_v19 = vsel %vm392_vm1, %v388_v14, %v389_v15  ;;  %v396_v20 = vsel %vm392_vm1, %v391_v16, %v388_v14  ;;  %1477 = vmatprep.mubr.msk.bf16.mxu1 %vm413_vm4, %v384_v22  ;;  %v532_v34 = vrot.slane %v316_v11, 6  ;;  %v533_v41 = vrot.slane %v317_v17, 6 }
  0x14   : > { %v405_v23 = vsel %vm1666_vm2, %v396_v20, 0.0  ;;  %v393_v26 = vsel %vm392_vm1, %v390_v21, %v391_v16  ;;  %v394_v27 = vsel %vm392_vm1, %v389_v15, %v390_v21  ;;  %1478 = vmatmul.mubr.msk.bf16.vlgmr.msra.gmra.mrb[0].mxu1 %vm413_vm4, %v385_v24  ;;  %v539_v36 = vsel %vm535_vm5, %v534_v32, %v531_v31 }
  0x15   : > { %v409_v25 = vpack.c.bf16 %v395_v19, %v405_v23  ;;  %v407_v28 = vsel %vm1670_vm3, %v394_v27, 0.0  ;;  %v538_v37 = vsel %vm535_vm5, %v531_v31, %v532_v34  ;;  %v548_v38 = vsel %vm1697_vm6, %v539_v36, 0.0  ;;  %1482 = vmatpush3.bf16.msra.mxu1 %v1557_v47 }
  0x16   : > { %v410_v29 = vpack.c.bf16 %v393_v26, %v407_v28  ;;  %v552_v39 = vpack.c.bf16 %v538_v37, %v548_v38  ;;  %v537_v43 = vsel %vm535_vm5, %v532_v34, %v533_v41  ;;  %v536_v44 = vsel %vm535_vm5, %v533_v41, %v534_v32  ;;  %1487 = vmatprep.subr.bf16.mxu1 %v1558_v48  ;;  %v1559_v34 = vld [vmem:[%s1879_s5 + $0x10] sm:$0xff]  }
  0x17   : > { %1459 = vmatprep.mubr.msk.bf16.mxu0 %vm413_vm4, %v409_v25  ;;  %v550_v45 = vsel %vm1710_vm7, %v537_v43, 0.0 }
  0x18   : > { %1460 = vmatmul.mubr.msk.bf16.vlgmr.msra.gmra.mrb[0].mxu0 %vm413_vm4, %v410_v29  ;;  %v553_v46 = vpack.c.bf16 %v536_v44, %v550_v45 }
  0x19   : > { %1464 = vmatpush3.bf16.msra.mxu0 %v480_v30  ;;  %1465 = vmatprep.mubr.msk.bf16.mxu0 %vm413_vm4, %v384_v22 }
  0x1a   : > { %1545 = vmatprep.subr.msk.bf16.mxu0 %vm420_vm0, %v554_v33 }
  0x24   : > { %1466 = vmatmul.mubr.msk.bf16.vlgmr.msra.gmra.mrb[0].mxu0 %vm413_vm4, %v385_v24 }
  0x25   : > { %1470 = vmatpush3.bf16.msra.mxu0 %v562_v40  ;;  %1471 = vmatprep.mubr.msk.bf16.mxu0 %vm413_vm4, %v552_v39 }
  0x26   : > { %1505 = vmatprep.subr.bf16.mxu0 %v1561_v35 }
  0x30   : > { %1472 = vmatmul.mubr.msk.bf16.vlgmr.msra.gmra.mrb[0].mxu0 %vm413_vm4, %v553_v46 }
  0x31   : > { %1506 = vmatpush3.bf16.msra.mxu0 %v1561_v35 }
  0xe7   : > { %v1479_v49 = vpop.f32.mrb[0].mxu1 }
  0xe8   : > { %v672_v50 = vpop.f32.mrb[1].mxu1  ;;  %v681_v56 = vadd.f32 %v1479_v49, %v1385_v53 }
  0xe9   : > { %v1480_v51 = vpop.f32.mrb[2].mxu1  ;;  %v673_v59 = vadd.f32 %v1385_v53, %v672_v50 }
  0xea   : > { %v675_v52 = vpop.f32.mrb[3].mxu1  ;;  %v684_v6 = vadd.f32 %v1480_v51, %v1385_v53 }
  0xeb   : > { %v676_v10 = vadd.f32 %v1385_v53, %v675_v52 }
 0x103   : > { %v1473_v55 = vpop.f32.mrb[0].mxu0 }
 0x104   : > { %v623_v57 = vadd.f32 %v1473_v55, %v1384_v54  ;;  %v598_v58 = vpop.f32.mrb[1].mxu0 }
 0x105   : > { %v621_v60 = vadd.f32 %v1384_v54, %v598_v58  ;;  %v1474_v61 = vpop.f32.mrb[2].mxu0 }
 0x106   : > { %v627_v62 = vmax.f32 %v623_v57, 0.0  ;;  %v624_v63 = vadd.f32 %v1474_v61, %v1384_v54  ;;  %v601_v0 = vpop.f32.mrb[3].mxu0 }
 0x107   : > { %v625_v2 = vmax.f32 %v621_v60, 0.0  ;;  %v622_v3 = vadd.f32 %v1384_v54, %v601_v0 }
 0x108   : > { %v689_v5 = vadd.f32 %v681_v56, %v627_v62  ;;  %v628_v7 = vmax.f32 %v624_v63, 0.0 }
 0x109   : > { %v687_v9 = vadd.f32 %v673_v59, %v625_v2  ;;  %v626_v11 = vmax.f32 %v622_v3, 0.0  ;;  %v1408_v3 = vld [vmem:[%s1875_s1 + $0xa] ss:$0 sm:$0xff] }
 0x10a   : > { %v697_v12 = vmul.f32 %v1388_v1, %v689_v5  ;;  %v690_v14 = vadd.f32 %v684_v6, %v628_v7 }
 0x10b   : > { %v695_v15 = vmul.f32 %v1388_v1, %v687_v9  ;;  %v688_v16 = vadd.f32 %v676_v10, %v626_v11  ;;  %v1409_v10 = vld [vmem:[%s1875_s1 + $0xb] ss:$0 sm:$0xff] }
 0x10c   : > { %v705_v17 = vadd.f32 %v1389_v8, %v697_v12  ;;  %v698_v19 = vmul.f32 %v1388_v1, %v690_v14 }
 0x10d   : > { %v703_v20 = vadd.f32 %v1389_v8, %v695_v15  ;;  %v696_v21 = vmul.f32 %v1388_v1, %v688_v16 }
 0x10e   : > { %v706_v22 = vadd.f32 %v1389_v8, %v698_v19  ;;  %v1741_v25 = vmax.f32 %v705_v17, 0.0 }
 0x10f   : > { %v1739_v23 = vmax.f32 %v703_v20, 0.0  ;;  %v704_v24 = vadd.f32 %v1389_v8, %v696_v21 }
 0x110   : > { %v1743_v26 = vmax.f32 %v706_v22, 0.0  ;;  %v825_v36 = vrot.slane %v1741_v25, 7  ;;  %v958_v51 = vrot.slane %v1741_v25, 6 }
 0x111   : > { %v1745_v27 = vmax.f32 %v704_v24, 0.0  ;;  %v823_v28 = vrot.slane %v1739_v23, 7  ;;  %v956_v45 = vrot.slane %v1739_v23, 6 }
 0x112   : > { %v826_v29 = vrot.slane %v1743_v26, 7  ;;  %v733_v32 = vpack.c.bf16 %v1743_v26, %v1741_v25  ;;  %v959_v46 = vrot.slane %v1743_v26, 6 }
 0x113   : > { %v732_v30 = vpack.c.bf16 %v1745_v27, %v1739_v23  ;;  %v824_v31 = vrot.slane %v1745_v27, 7  ;;  %v957_v18 = vrot.slane %v1745_v27, 6 }
 0x114   : > { %v830_v33 = vsel %vm392_vm1, %v826_v29, %v823_v28  ;;  %v827_v43 = vsel %vm392_vm1, %v825_v36, %v826_v29  ;;  %v963_v47 = vsel %vm535_vm5, %v959_v46, %v956_v45  ;;  %v960_v54 = vsel %vm535_vm5, %v958_v51, %v959_v46 }
 0x115   : > { %1483 = vmatprep.mubr.msk.bf16.mxu1 %vm715_vm8, %v732_v30  ;;  %v829_v37 = vsel %vm392_vm1, %v823_v28, %v824_v31  ;;  %v831_v38 = vsel %vm1666_vm2, %v830_v33, 0.0  ;;  %v828_v40 = vsel %vm392_vm1, %v824_v31, %v825_v36  ;;  %v964_v49 = vsel %vm1697_vm6, %v963_v47, 0.0 }
 0x116   : > { %1484 = vmatmul.mubr.msk.bf16.vlgmr.msra.gmra.mrb[4].mxu1 %vm715_vm8, %v733_v32  ;;  %v835_v39 = vpack.c.bf16 %v829_v37, %v831_v38  ;;  %v833_v41 = vsel %vm1670_vm3, %v828_v40, 0.0  ;;  %v961_v52 = vsel %vm535_vm5, %v957_v18, %v958_v51  ;;  %v714_v46 = vand.u32 2147483647, %v1743_v26 }
 0x117   : > { %1488 = vmatpush3.bf16.msra.mxu1 %v1558_v48  ;;  %v836_v44 = vpack.c.bf16 %v827_v43, %v833_v41  ;;  %v962_v48 = vsel %vm535_vm5, %v956_v45, %v957_v18  ;;  %v966_v53 = vsel %vm1710_vm7, %v961_v52, 0.0  ;;  %v712_v43 = vand.u32 2147483647, %v1745_v27 }
 0x118   : > { %1489 = vmatprep.mubr.msk.bf16.mxu1 %vm715_vm8, %v835_v39  ;;  %1493 = vmatprep.subr.bf16.mxu1 %v1559_v34  ;;  %v968_v50 = vpack.c.bf16 %v962_v48, %v964_v49  ;;  %v969_v55 = vpack.c.bf16 %v960_v54, %v966_v53  ;;  %v713_v47 = vand.u32 2147483647, %v1741_v25  ;;  %v725_v48 = vsel %vm715_vm8, %v714_v46, 0.0 }
 0x119   : > { %v719_v45 = vsel %vm715_vm8, %v712_v43, 0.0 }
 0x11e   : > { %1490 = vmatmul.mubr.msk.bf16.vlgmr.msra.gmra.mrb[8].mxu1 %vm715_vm8, %v836_v44 }
 0x11f   : > { %1494 = vmatpush3.bf16.msra.mxu1 %v1559_v34  ;;  %1495 = vmatprep.mubr.msk.bf16.mxu1 %vm715_vm8, %v732_v30 }
 0x120   : > { %1499 = vmatprep.subr.bf16.mxu1 %v1560_v13 }
 0x12a   : > { %1496 = vmatmul.mubr.msk.bf16.vlgmr.msra.gmra.mrb[8].mxu1 %vm715_vm8, %v733_v32 }
 0x12b   : > { %1500 = vmatpush3.bf16.msra.mxu1 %v1560_v13  ;;  %1501 = vmatprep.mubr.msk.bf16.mxu1 %vm715_vm8, %v968_v50  ;;  %v711_v13 = vand.u32 2147483647, %v1739_v23 }
 0x12d   : > { %v716_v18 = vsel %vm715_vm8, %v711_v13, 0.0 }
 0x136   : > { %1502 = vmatmul.mubr.msk.bf16.vlgmr.msra.gmra.mrb[8].mxu1 %vm715_vm8, %v969_v55 }
 0x1e9   : > { %v1800_v56 = vpop.f32.mrb[4].mxu1 }
 0x1ea   : > { %v1802_v57 = vpop.f32.mrb[5].mxu1 }
 0x1eb   : > { %v1804_v58 = vpop.f32.mrb[6].mxu1 }
 0x1ec   : > { %v1806_v42 = vpop.f32.mrb[7].mxu1 }
 0x209   : > { %v1503_v59 = vpop.f32.mrb[8].mxu1 }
 0x20a   : > { %v1043_v60 = vadd.f32 %v1503_v59, %v1407_v4  ;;  %v1018_v61 = vpop.f32.mrb[9].mxu1 }
 0x20b   : > { %v1041_v62 = vadd.f32 %v1407_v4, %v1018_v61  ;;  %v1504_v63 = vpop.f32.mrb[10].mxu1 }
 0x20c   : > { %v1047_v0 = vmax.f32 %v1043_v60, 0.0  ;;  %v1044_v1 = vadd.f32 %v1504_v63, %v1407_v4  ;;  %v1021_v2 = vpop.f32.mrb[11].mxu1  ;;  %v1393_v63 = vld [vmem:[%s1875_s1 + $0x4] ss:$0 sm:$0xff] }
 0x20d   : > { %v1045_v5 = vmax.f32 %v1041_v62, 0.0  ;;  %v1042_v6 = vadd.f32 %v1407_v4, %v1021_v2 }
 0x20e   : > { %v1051_v7 = vadd.f32 %v1047_v0, %v1741_v25  ;;  %v1048_v8 = vmax.f32 %v1044_v1, 0.0  ;;  %v815_v25 = vld [vmem:[%s1881_s7] sm:$0xf] }
 0x20f   : > { %v1049_v9 = vadd.f32 %v1045_v5, %v1739_v23  ;;  %v1046_v11 = vmax.f32 %v1042_v6, 0.0  ;;  %v1414_v23 = vld [vmem:[%s1881_s7 + $0x4] sm:$0xf] }
 0x210   : > { %v1059_v12 = vmul.f32 %v1408_v3, %v1051_v7  ;;  %v1052_v14 = vadd.f32 %v1048_v8, %v1743_v26  ;;  %1547 = vmatprep.subr.msk.bf16.mxu0 %vm420_vm0, %v1414_v23  ;;  %v1185_v26 = vsel %vm420_vm0, %v1414_v23, 0 }
 0x211   : > { %v1057_v15 = vmul.f32 %v1408_v3, %v1049_v9  ;;  %v1050_v16 = vadd.f32 %v1046_v11, %v1745_v27  ;;  %v722_v27 = vsel %vm715_vm8, %v713_v47, 0.0 }
 0x212   : > { %v1060_v17 = vmul.f32 %v1408_v3, %v1052_v14  ;;  %v1067_v19 = vadd.f32 %v1409_v10, %v1059_v12 }
 0x213   : > { %v1058_v20 = vmul.f32 %v1408_v3, %v1050_v16  ;;  %v1065_v21 = vadd.f32 %v1409_v10, %v1057_v15 }
 0x214   : > { %v1068_v22 = vadd.f32 %v1409_v10, %v1060_v17  ;;  %v1071_v24 = vmax.f32 %v1067_v19, 0.0 }
 0x215   : > { %v1066_v28 = vadd.f32 %v1409_v10, %v1058_v20  ;;  %v1069_v29 = vmax.f32 %v1065_v21, 0.0 }
 0x216   : > { %v1072_v30 = vmax.f32 %v1068_v22, 0.0  ;;  %v1075_v31 = vand.u32 2147483647, %v1071_v24 }
 0x217   : > { %v1070_v32 = vmax.f32 %v1066_v28, 0.0  ;;  %v1073_v33 = vand.u32 2147483647, %v1069_v29 }
 0x218   : > { %v1083_v34 = vsel %vm715_vm8, %v1075_v31, 0.0  ;;  %v1094_v36 = vpack.c.bf16 %v1072_v30, %v1071_v24  ;;  %v1076_v37 = vand.u32 2147483647, %v1072_v30 }
 0x219   : > { %1084 = vadd.xlane.f32.xlu1 %v1083_v34  ;;  %v1077_v38 = vsel %vm715_vm8, %v1073_v33, 0.0  ;;  %v1093_v39 = vpack.c.bf16 %v1070_v32, %v1069_v29  ;;  %v1074_v40 = vand.u32 2147483647, %v1070_v32 }
 0x21a   : > { %1078 = vadd.xlane.f32.xlu0 %v1077_v38  ;;  %v1086_v41 = vsel %vm715_vm8, %v1076_v37, 0.0 }
 0x21b   : > { %1507 = vmatprep.mubr.msk.bf16.mxu0 %vm715_vm8, %v1093_v39  ;;  %v1080_v44 = vsel %vm715_vm8, %v1074_v40, 0.0  ;;  %v1243_v40 = vsel %vm420_vm0, %v815_v25, 0 }
 0x21c   : > { %1508 = vmatmul.mubr.msk.bf16.vlgmr.msra.gmra.mrb[4].mxu0 %vm715_vm8, %v1094_v36 }
 0x21d   : > { %1087 = vadd.xlane.f32.xlu1 %v1086_v41  ;;  %1512 = vmatpush3.bf16.msra.mxu0 %v1185_v26  ;;  %v1419_v41 = vld [vmem:[%s1875_s1 + $0x10] ss:$0 sm:$0xff] }
 0x21e   : > { %1081 = vadd.xlane.f32.xlu0 %v1080_v44  ;;  %1548 = vmatprep.subr.msk.bf16.mxu0 %vm420_vm0, %v815_v25 }
 0x221   : > { %720 = vadd.xlane.f32.xlu1 %v719_v45 }
 0x222   : > { %717 = vadd.xlane.f32.xlu0 %v716_v18 }
 0x225   : > { %726 = vadd.xlane.f32.xlu1 %v725_v48 }
 0x226   : > { %723 = vadd.xlane.f32.xlu0 %v722_v27 }
 0x2a6   : > { %v1085_v49 = vpop.xlane.xlu1 %1084 }
 0x2a7   : > { %v1079_v50 = vpop.xlane.xlu0 %1078  ;;  %v1091_v15 = vmax.f32 %v1085_v49, 1e-12 }
 0x2a8   : > { %v1089_v16 = vmax.f32 %v1079_v50, 1e-12 }
 0x2aa   : > { %v1088_v51 = vpop.xlane.xlu1 %1087 }
 0x2ab   : > { %v1082_v52 = vpop.xlane.xlu0 %1081  ;;  %v1092_v17 = vmax.f32 %v1088_v51, 1e-12 }
 0x2ac   : > { %v1090_v19 = vmax.f32 %v1082_v52, 1e-12 }
 0x2ae   : > { %v721_v53 = vpop.xlane.xlu1 %720 }
 0x2af   : > { %v729_v54 = vmax.f32 %v721_v53, 1e-12  ;;  %v718_v55 = vpop.xlane.xlu0 %717 }
 0x2b0   : > { %v728_v35 = vmax.f32 %v718_v55, 1e-12 }
 0x2b1   : > { %1562 = vrcp.f32 %v729_v54 }
 0x2b2   : > { %1564 = vrcp.f32 %v728_v35  ;;  %v727_v4 = vpop.xlane.xlu1 %726 }
 0x2b3   : > { %v731_v59 = vmax.f32 %v727_v4, 1e-12  ;;  %v724_v60 = vpop.xlane.xlu0 %723 }
 0x2b4   : > { %v730_v61 = vmax.f32 %v724_v60, 1e-12 }
 0x2b5   : > { %1566 = vrcp.f32 %v731_v59 }
 0x2b6   : > { %1568 = vrcp.f32 %v730_v61 }
 0x2b7   : > { %1570 = vrcp.f32 %v1091_v15 }
 0x2b8   : > { %1572 = vrcp.f32 %v1089_v16 }
 0x2b9   : > { %1574 = vrcp.f32 %v1092_v17 }
 0x2ba   : > { %1576 = vrcp.f32 %v1090_v19 }
 0x2bb   : > { %v1563_v62 = vpop.eup %1562 }
 0x2bc   : > { %v1565_v0 = vpop.eup %1564  ;;  %v800_v1 = vmul.f32 %v1563_v62, %v1806_v42 }
 0x2bd   : > { %v798_v2 = vmul.f32 %v1565_v0, %v1802_v57 }
 0x2be   : > { %v810_v3 = vadd.f32 %v1393_v63, %v800_v1 }
 0x2bf   : > { %v1567_v5 = vpop.eup %1566  ;;  %v809_v6 = vadd.f32 %v1393_v63, %v798_v2 }
 0x2c0   : > { %v1569_v7 = vpop.eup %1568  ;;  %v804_v8 = vmul.f32 %v1567_v5, %v1804_v58 }
 0x2c1   : > { %v802_v9 = vmul.f32 %v1569_v7, %v1800_v56  ;;  %v813_v10 = vpack.c.bf16 %v810_v3, %v809_v6  ;;  %v1571_v57 = vpop.eup %1570  ;;  %v1413_v56 = vld [vmem:[%s1875_s1 + $0xc] ss:$0 sm:$0xff] }
 0x2c2   : > { %v812_v11 = vadd.f32 %v1393_v63, %v804_v8  ;;  %v1573_v20 = vpop.eup %1572 }
 0x2c3   : > { %v811_v12 = vadd.f32 %v1393_v63, %v802_v9  ;;  %v1575_v58 = vpop.eup %1574 }
 0x2c4   : > { %v1577_v29 = vpop.eup %1576 }
 0x2c5   : > { %v814_v14 = vpack.c.bf16 %v812_v11, %v811_v12 }
 0x2ef   : > { %v1509_v42 = vpop.f32.mrb[4].mxu0 }
 0x2f0   : > { %v1163_v21 = vmul.f32 %v1571_v57, %v1509_v42  ;;  %v1143_v22 = vpop.f32.mrb[5].mxu0 }
 0x2f1   : > { %v1159_v24 = vmul.f32 %v1573_v20, %v1143_v22  ;;  %v1510_v28 = vpop.f32.mrb[6].mxu0 }
 0x2f2   : > { %v1165_v30 = vmul.f32 %v1575_v58, %v1510_v28  ;;  %v1146_v31 = vpop.f32.mrb[7].mxu0  ;;  %v1172_v33 = vadd.f32 %v1413_v56, %v1163_v21 }
 0x2f3   : > { %v1161_v32 = vmul.f32 %v1577_v29, %v1146_v31  ;;  %v1170_v36 = vadd.f32 %v1413_v56, %v1159_v24 }
 0x2f4   : > { %v1173_v34 = vadd.f32 %v1413_v56, %v1165_v30 }
 0x2f5   : > { %v1171_v37 = vadd.f32 %v1413_v56, %v1161_v32 }
 0x2f6   : > { %v1175_v38 = vpack.c.bf16 %v1173_v34, %v1172_v33 }
 0x2f7   : > { %v1174_v39 = vpack.c.bf16 %v1171_v37, %v1170_v36 }
 0x2f9   : > { %1513 = vmatprep.mubr.msk.bf16.mxu0 %vm413_vm4, %v1174_v39 }
 0x2fa   : > { %1514 = vmatmul.mubr.msk.bf16.vlgmr.msra.gmra.mrb[8].mxu0 %vm413_vm4, %v1175_v38 }
 0x2fb   : > { %1518 = vmatpush3.bf16.msra.mxu0 %v1243_v40  ;;  %1519 = vmatprep.mubr.msk.bf16.mxu0 %vm413_vm4, %v813_v10 }
 0x306   : > { %1520 = vmatmul.mubr.msk.bf16.vlgmr.msra.gmra.mrb[8].mxu0 %vm413_vm4, %v814_v14 }
 0x3d9   : > { %v1521_v43 = vpop.f32.mrb[8].mxu0 }
 0x3da   : > { %v1279_v44 = vpop.f32.mrb[9].mxu0  ;;  %v1301_v46 = vadd.f32 %v1521_v43, %v1419_v41 }
 0x3db   : > { %v1299_v13 = vadd.f32 %v1419_v41, %v1279_v44  ;;  %v1522_v45 = vpop.f32.mrb[10].mxu0 }
 0x3dc   : > { %v1282_v18 = vpop.f32.mrb[11].mxu0  ;;  %1305 = vst.msk [vmem:[%s312_s18 + $0x10] sm:$0xff] %vm413_vm4, %v1301_v46  ;;  %v1302_v48 = vadd.f32 %v1522_v45, %v1419_v41 }
 0x3dd   : > { %1303 = vst.msk [vmem:[%s312_s18] sm:$0xff] %vm413_vm4, %v1299_v13  ;;  %v1300_v47 = vadd.f32 %v1419_v41, %v1282_v18 }
 0x3de   : > { %1306 = vst.msk [vmem:[%s312_s18 + $0x18] sm:$0xff] %vm413_vm4, %v1302_v48 }
 0x3df   : > { %1304 = vst.msk [vmem:[%s312_s18 + $0x8] sm:$0xff] %vm413_vm4, %v1300_v47 }
 0x3e0 PF: > { %s18_s27 = sadd.s32 1, %s1584_s27  }
 0x3e1   : > { %p15_p4 = scmp.ge.s32.totalorder %s18_s27, 4  }
 0x3e3   :  { %17 = sbr.rel (!%p15_p4) target bundleno = 1 (0x1), region = 87 }

</bundles_post_ra>
